<compile_context>
chip_gen: v7x
topology: tpu7x:2x2x1
jax: 0.10.0
libtpu: 0.0.40
codegen_flags: <defaults>
</compile_context>

<pallas_src>
import functools

import jax
import jax.numpy as jnp
from jax.experimental import pallas as pl
from jax.experimental.pallas import tpu as pltpu


def _round_up(x, m):
    return ((x + m - 1) // m) * m


def _vmem_capacity_bytes():
    # Generation-aware VMEM capacity (v5e/v6e: 128 MiB, v7x: 64 MiB per TC).
    try:
        return int(pltpu.get_tpu_info().vmem_capacity_bytes)
    except Exception:
        return 64 * 1024 * 1024  # v7x-safe fallback


# ---------------------------------------------------------------------------
# Pallas kernel: fused fc1 (K-tiled, f32 accumulated) + LayerNorm + ReLU + fc2
# ---------------------------------------------------------------------------
def _mlp_kernel(x_ref, w1_ref, b1_ref, g_ref, beta_ref, w2_ref, b2_ref,
                o_ref, acc_ref, *, h_true):
    # grid = (batch tiles ["parallel"], K tiles ["arbitrary" reduction, trailing]).
    k = pl.program_id(1)

    @pl.when(k == 0)
    def _init():
        acc_ref[...] = jnp.zeros_like(acc_ref)

    # fc1 partial product: bf16 MXU inputs (cast upstream), f32 accumulation.
    acc_ref[...] += jnp.dot(x_ref[...], w1_ref[...],
                            preferred_element_type=jnp.float32)

    @pl.when(k == pl.num_programs(1) - 1)
    def _epilogue():
        b1 = b1_ref[...]
        gamma = g_ref[...]
        beta = beta_ref[...]

        h = acc_ref[...] + b1                    # (TB, H_pad); padded lanes are exactly 0
        h_pad = h.shape[-1]

        # LayerNorm (eps = 1e-5, PyTorch default) over the TRUE hidden width only.
        # Padded lanes of h are zero (w1/b1 zero-padded) and carry gamma = beta = 0,
        # so they remain zero after normalization and contribute nothing to fc2.
        inv_h = 1.0 / h_true
        mean = jnp.sum(h, axis=-1, keepdims=True) * inv_h
        cent = h - mean
        if h_pad != h_true:
            col = jax.lax.broadcasted_iota(jnp.int32, h.shape, 1)
            cent_m = jnp.where(col < h_true, cent, 0.0)
        else:
            cent_m = cent
        var = jnp.sum(cent_m * cent_m, axis=-1, keepdims=True) * inv_h
        h_norm = cent * jax.lax.rsqrt(var + 1e-5) * gamma + beta

        # ReLU; Dropout(p=0.3) is identity in eval/inference mode.
        h_act = jnp.maximum(h_norm, 0.0)

        # fc2 into a lane-dense (TB, 128) output slab (w2/b2 zero-padded outside).
        out = jnp.dot(h_act.astype(jnp.bfloat16), w2_ref[...],
                      preferred_element_type=jnp.float32) + b2_ref[...]
        o_ref[...] = out.astype(o_ref.dtype)


# ---------------------------------------------------------------------------
# Wrapper: padding, generation-aware tiling, grid construction
# ---------------------------------------------------------------------------
def mlp_forward(x_flat, w1, b1, gamma, beta, w2, b2, *, max_tk=None):
    B, IN = x_flat.shape
    H = w1.shape[1]
    O = w2.shape[1]

    OPAD = 128                                   # lane-dense output slab
    H_pad = _round_up(H, 128)                    # lane-dense hidden dim
    IN128 = _round_up(IN, 128)

    vmem_cap = _vmem_capacity_bytes()
    budget = int(vmem_cap * 0.65)                # headroom for compiler internals

    # Batch tile: multiple of 16 (bf16 sublane packing).
    TB = min(128, _round_up(B, 16))
    B_pad = _round_up(B, TB)
    nb = B_pad // TB
    # v7x has 2 TensorCores; ensure the "parallel" batch axis has >= 2 slices when possible.
    if nb == 1 and TB % 32 == 0:
        TB //= 2
        nb = 2

    # Conservative VMEM footprint (assume everything double-buffered).
    def vmem_need(tk):
        return (2 * TB * tk * 2                  # x tile (bf16), double buffered
                + 2 * tk * H_pad * 2             # w1 K-slab (bf16), double buffered
                + 2 * H_pad * OPAD * 2           # w2 (bf16)
                + 2 * 3 * 8 * H_pad * 4          # b1/gamma/beta ((1,H) pads to 8 sublanes)
                + 2 * 8 * OPAD * 4               # b2
                + TB * H_pad * 4                 # f32 accumulator scratch
                + 2 * TB * OPAD * 4)             # output tile, double buffered

    # Contraction tile: prefer fully VMEM-resident w1 (constant block index -> one DMA
    # for the whole call); otherwise the largest K-slab that fits (w1 then re-streamed
    # once per batch tile).
    tk_cap = IN128 if max_tk is None else min(_round_up(max_tk, 128), IN128)
    if tk_cap == IN128 and vmem_need(IN128) <= budget:
        TK = IN128
    else:
        TK = _round_up(min(tk_cap, 2048), 128)
        while TK > 512 and vmem_need(TK) > budget:
            TK -= 512
        TK = max(TK, 128)
    IN_pad = _round_up(IN, TK)
    nk = IN_pad // TK

    # Zero-pad: padded K columns / hidden lanes contribute 0; padded batch rows and
    # output lanes are sliced off below.
    x_p = jnp.pad(x_flat.astype(jnp.bfloat16), ((0, B_pad - B), (0, IN_pad - IN)))
    w1_p = jnp.pad(w1.astype(jnp.bfloat16), ((0, IN_pad - IN), (0, H_pad - H)))
    b1_p = jnp.pad(b1, ((0, 0), (0, H_pad - H)))
    g_p = jnp.pad(gamma, ((0, 0), (0, H_pad - H)))
    be_p = jnp.pad(beta, ((0, 0), (0, H_pad - H)))
    w2_p = jnp.pad(w2.astype(jnp.bfloat16), ((0, H_pad - H), (0, OPAD - O)))
    b2_p = jnp.pad(b2, ((0, 0), (0, OPAD - O)))

    grid_spec = pltpu.PrefetchScalarGridSpec(
        num_scalar_prefetch=0,
        grid=(nb, nk),
        in_specs=[
            pl.BlockSpec((TB, TK), lambda i, k: (i, k)),      # x tile (pipelined)
            pl.BlockSpec((TK, H_pad), lambda i, k: (k, 0)),   # w1 (resident when nk==1)
            pl.BlockSpec((1, H_pad), lambda i, k: (0, 0)),    # b1
            pl.BlockSpec((1, H_pad), lambda i, k: (0, 0)),    # gamma
            pl.BlockSpec((1, H_pad), lambda i, k: (0, 0)),    # beta
            pl.BlockSpec((H_pad, OPAD), lambda i, k: (0, 0)), # w2
            pl.BlockSpec((1, OPAD), lambda i, k: (0, 0)),     # b2
        ],
        out_specs=pl.BlockSpec((TB, OPAD), lambda i, k: (i, 0)),
        scratch_shapes=[pltpu.VMEM((TB, H_pad), jnp.float32)],  # fc1 accumulator
    )

    # w1 is DMA'd once when fully resident (constant block index), nb times when K-tiled.
    w1_streams = 1 if nk == 1 else nb
    cost = pl.CostEstimate(
        flops=2 * B_pad * IN_pad * H_pad + 2 * B_pad * H_pad * OPAD,
        transcendentals=B_pad,                                   # rsqrt per row
        bytes_accessed=(x_p.size * 2
                        + w1_p.size * 2 * w1_streams
                        + w2_p.size * 2
                        + 3 * H_pad * 4 + OPAD * 4
                        + B_pad * OPAD * 4),
    )

    vmem_limit = int(min(vmem_cap * 0.85,
                         max(32 * 1024 * 1024, vmem_need(TK) + 4 * 1024 * 1024)))

    out_p = pl.pallas_call(
        functools.partial(_mlp_kernel, h_true=H),
        out_shape=jax.ShapeDtypeStruct((B_pad, OPAD), jnp.float32),
        grid_spec=grid_spec,
        compiler_params=pltpu.CompilerParams(
            dimension_semantics=("parallel", "arbitrary"),
            vmem_limit_bytes=vmem_limit,
        ),
        cost_estimate=cost,
    )(x_p, w1_p, b1_p, g_p, be_p, w2_p, b2_p)

    return out_p[:B, :O]


# ---------------------------------------------------------------------------
# Full forward (embedding gather stays in plain JAX glue, emitted in bf16)
# ---------------------------------------------------------------------------
def hate_speech_detector_fnn_forward(text, params, *, max_tk=None):
    # TODO(synk): fuse the embedding gather into the kernel (scalar-prefetch the token ids,
    # keep the table at memory_space=pl.ANY and make_async_copy the rows per tile); for now
    # the gathered activation is emitted directly in bf16 to halve its HBM round-trip.
    emb = jnp.take(params["embedding"], text, axis=0).astype(jnp.bfloat16)  # (B, L, E)
    B = emb.shape[0]
    x_flat = emb.reshape(B, -1)                                             # (B, L*E)
    return mlp_forward(
        x_flat,
        params["w1"], params["b1"],
        params["ln_gamma"], params["ln_beta"],
        params["w2"], params["b2"],
        max_tk=max_tk,
    )


# ---------------------------------------------------------------------------
# Pure-JAX reference (f32 end-to-end) for the correctness check
# ---------------------------------------------------------------------------
def reference_forward(text, params):
    emb = jnp.take(params["embedding"], text, axis=0)
    x = emb.reshape(emb.shape[0], -1)
    h = x @ params["w1"] + params["b1"]
    mean = jnp.mean(h, axis=-1, keepdims=True)
    var = jnp.mean((h - mean) ** 2, axis=-1, keepdims=True)
    h = (h - mean) * jax.lax.rsqrt(var + 1e-5)
    h = h * params["ln_gamma"] + params["ln_beta"]
    h = jnp.maximum(h, 0.0)
    return h @ params["w2"] + params["b2"]


# ---------------------------------------------------------------------------
# Deterministic parameter init (shapes per the module's __init__)
# ---------------------------------------------------------------------------
def init_params(key, vocab_size, embed_dim, hid_dim, output_dim, max_seq_length, pad_idx):
    k_emb, k_w1, k_b1, k_w2, k_b2 = jax.random.split(key, 5)
    in_dim = embed_dim * max_seq_length

    embedding = jax.random.normal(k_emb, (vocab_size, embed_dim), jnp.float32)
    embedding = embedding.at[pad_idx].set(0.0)                 # padding_idx row = 0

    bound1 = 1.0 / jnp.sqrt(in_dim)
    w1 = jax.random.uniform(k_w1, (in_dim, hid_dim), jnp.float32, -bound1, bound1)
    b1 = jax.random.uniform(k_b1, (1, hid_dim), jnp.float32, -bound1, bound1)

    bound2 = 1.0 / jnp.sqrt(hid_dim)
    w2 = jax.random.uniform(k_w2, (hid_dim, output_dim), jnp.float32, -bound2, bound2)
    b2 = jax.random.uniform(k_b2, (1, output_dim), jnp.float32, -bound2, bound2)

    return {
        "embedding": embedding,
        "w1": w1, "b1": b1,
        "ln_gamma": jnp.ones((1, hid_dim), jnp.float32),
        "ln_beta": jnp.zeros((1, hid_dim), jnp.float32),
        "w2": w2, "b2": b2,
    }


if __name__ == "__main__":
    def run_case(vocab, embed, hid, out_dim, seq, batch, max_tk=None):
        key = jax.random.PRNGKey(0)
        k_params, k_text = jax.random.split(key)
        params = init_params(k_params, vocab, embed, hid, out_dim, seq, 0)
        text = jax.random.randint(k_text, (batch, seq), 0, vocab, dtype=jnp.int32)

        out = hate_speech_detector_fnn_forward(text, params, max_tk=max_tk)
        out = jax.block_until_ready(out)
        assert out.shape == (batch, out_dim)

        ref = reference_forward(text, params)
        err = float(jnp.max(jnp.abs(out - ref)))
        scale = float(jnp.max(jnp.abs(ref))) + 1e-6
        rel = err / scale
        assert rel < 2e-2, f"relative error too large: {rel}"

    # Small demo shapes (resident-w1 path, single K step).
    run_case(vocab=64, embed=8, hid=32, out_dim=2, seq=8, batch=2)
    # Slightly larger case forcing the K-tiled accumulator path (TK=512 < IN=1600).
    run_case(vocab=128, embed=16, hid=64, out_dim=2, seq=100, batch=4, max_tk=512)

    print("KERNEL_OK")
</pallas_src>

<mosaic_0001>
module attributes {stable_mosaic.version = 11 : i64} {
  func.func @_mlp_kernel(%arg0: i32, %arg1: i32, %arg2: memref<16x128xbf16, #tpu.memory_space<vmem>>, %arg3: memref<128x128xbf16, #tpu.memory_space<vmem>>, %arg4: memref<1x128xf32, #tpu.memory_space<vmem>>, %arg5: memref<1x128xf32, #tpu.memory_space<vmem>>, %arg6: memref<1x128xf32, #tpu.memory_space<vmem>>, %arg7: memref<128x128xbf16, #tpu.memory_space<vmem>>, %arg8: memref<1x128xf32, #tpu.memory_space<vmem>>, %arg9: memref<16x128xf32, #tpu.memory_space<vmem>>, %arg10: memref<16x128xf32, #tpu.memory_space<vmem>>) attributes {dimension_semantics = [#tpu.dimension_semantics<parallel>, #tpu.dimension_semantics<arbitrary>], iteration_bounds = array<i64: 1, 1>, scalar_prefetch = 0 : i64, scratch_operands = 1 : i64, tpu.core_type = #tpu.core_type<tc>, window_params = [{transform_indices = @transform_0, window_bounds = array<i64: 16, 128>}, {transform_indices = @transform_1, window_bounds = array<i64: 128, 128>}, {pipeline_mode = #tpu.pipeline_mode<synchronous>, transform_indices = @transform_2, window_bounds = array<i64: 1, 128>}, {pipeline_mode = #tpu.pipeline_mode<synchronous>, transform_indices = @transform_3, window_bounds = array<i64: 1, 128>}, {pipeline_mode = #tpu.pipeline_mode<synchronous>, transform_indices = @transform_4, window_bounds = array<i64: 1, 128>}, {pipeline_mode = #tpu.pipeline_mode<synchronous>, transform_indices = @transform_5, window_bounds = array<i64: 128, 128>}, {pipeline_mode = #tpu.pipeline_mode<synchronous>, transform_indices = @transform_6, window_bounds = array<i64: 1, 128>}, {transform_indices = @transform_7, window_bounds = array<i64: 16, 128>}]} {
    %c0_i32 = arith.constant 0 : i32
    %0 = arith.cmpi eq, %arg1, %c0_i32 : i32
    %1 = arith.extui %0 : i1 to i32
    %c0_i32_0 = arith.constant 0 : i32
    %2 = arith.cmpi ne, %1, %c0_i32_0 : i32
    scf.if %2 {
      %cst_10 = arith.constant 0.000000e+00 : f32
      %12 = vector.broadcast %cst_10 : f32 to vector<16x128xf32>
      %c0_11 = arith.constant 0 : index
      %c0_12 = arith.constant 0 : index
      %13 = vector.load %arg10[%c0_11, %c0_12] : memref<16x128xf32, #tpu.memory_space<vmem>>, vector<16x128xf32>
      tpu.vector_store %arg10[%c0_11, %c0_12], %12 {strides = array<i32>} : memref<16x128xf32, #tpu.memory_space<vmem>>, vector<16x128xf32>,
    } else {
    }
    %c0 = arith.constant 0 : index
    %c0_1 = arith.constant 0 : index
    %3 = vector.load %arg10[%c0, %c0_1] : memref<16x128xf32, #tpu.memory_space<vmem>>, vector<16x128xf32>
    %c0_2 = arith.constant 0 : index
    %c0_3 = arith.constant 0 : index
    %4 = vector.load %arg2[%c0_2, %c0_3] : memref<16x128xbf16, #tpu.memory_space<vmem>>, vector<16x128xbf16>
    %c0_4 = arith.constant 0 : index
    %c0_5 = arith.constant 0 : index
    %5 = vector.load %arg3[%c0_4, %c0_5] : memref<128x128xbf16, #tpu.memory_space<vmem>>, vector<128x128xbf16>
    %cst = arith.constant dense<0.000000e+00> : vector<16x128xf32>
    %6 = tpu.matmul %4, %5, %cst {dimension_numbers = #tpu.dot_dimension_numbers<[1], [0], [0], [1], [0, 0, 1, 1], [], []>} : vector<16x128xbf16>, vector<128x128xbf16>, vector<16x128xf32> -> vector<16x128xf32>
    %7 = arith.addf %3, %6 : vector<16x128xf32>
    %c0_6 = arith.constant 0 : index
    %c0_7 = arith.constant 0 : index
    %8 = vector.load %arg10[%c0_6, %c0_7] : memref<16x128xf32, #tpu.memory_space<vmem>>, vector<16x128xf32>
    tpu.vector_store %arg10[%c0_6, %c0_7], %7 {strides = array<i32>} : memref<16x128xf32, #tpu.memory_space<vmem>>, vector<16x128xf32>,
    %c0_i32_8 = arith.constant 0 : i32
    %9 = arith.cmpi eq, %arg1, %c0_i32_8 : i32
    %10 = arith.extui %9 : i1 to i32
    %c0_i32_9 = arith.constant 0 : i32
    %11 = arith.cmpi ne, %10, %c0_i32_9 : i32
    scf.if %11 {
      %c0_10 = arith.constant 0 : index
      %c0_11 = arith.constant 0 : index
      %12 = vector.load %arg4[%c0_10, %c0_11] : memref<1x128xf32, #tpu.memory_space<vmem>>, vector<1x128xf32>
      %c0_12 = arith.constant 0 : index
      %c0_13 = arith.constant 0 : index
      %13 = vector.load %arg5[%c0_12, %c0_13] : memref<1x128xf32, #tpu.memory_space<vmem>>, vector<1x128xf32>
      %c0_14 = arith.constant 0 : index
      %c0_15 = arith.constant 0 : index
      %14 = vector.load %arg6[%c0_14, %c0_15] : memref<1x128xf32, #tpu.memory_space<vmem>>, vector<1x128xf32>
      %c0_16 = arith.constant 0 : index
      %c0_17 = arith.constant 0 : index
      %15 = vector.load %arg10[%c0_16, %c0_17] : memref<16x128xf32, #tpu.memory_space<vmem>>, vector<16x128xf32>
      %16 = vector.broadcast %12 : vector<1x128xf32> to vector<16x128xf32>
      %17 = arith.addf %15, %16 : vector<16x128xf32>
      %cst_18 = arith.constant dense<0.000000e+00> : vector<16xf32>
      %18 = vector.multi_reduction <add>, %17, %cst_18 [1] : vector<16x128xf32> to vector<16xf32>
      %19 = vector.shape_cast %18 : vector<16xf32> to vector<16x1xf32>
      %cst_19 = arith.constant 3.125000e-02 : f32
      %20 = vector.broadcast %cst_19 : f32 to vector<16x1xf32>
      %21 = arith.mulf %19, %20 : vector<16x1xf32>
      %22 = vector.broadcast %21 : vector<16x1xf32> to vector<16x128xf32>
      %23 = arith.subf %17, %22 : vector<16x128xf32>
      %24 = tpu.iota {dimensions = array<i32: 1>} : vector<16x128xi32>
      %c32_i32 = arith.constant 32 : i32
      %25 = vector.broadcast %c32_i32 : i32 to vector<16x128xi32>
      %26 = arith.cmpi slt, %24, %25 : vector<16x128xi32>
      %cst_20 = arith.constant 0.000000e+00 : f32
      %27 = vector.broadcast %cst_20 : f32 to vector<16x128xf32>
      %28 = arith.select %26, %23, %27 : vector<16x128xi1>, vector<16x128xf32>
      %29 = arith.mulf %28, %28 : vector<16x128xf32>
      %cst_21 = arith.constant dense<0.000000e+00> : vector<16xf32>
      %30 = vector.multi_reduction <add>, %29, %cst_21 [1] : vector<16x128xf32> to vector<16xf32>
      %31 = vector.shape_cast %30 : vector<16xf32> to vector<16x1xf32>
      %cst_22 = arith.constant 3.125000e-02 : f32
      %32 = vector.broadcast %cst_22 : f32 to vector<16x1xf32>
      %33 = arith.mulf %31, %32 : vector<16x1xf32>
      %cst_23 = arith.constant 9.99999974E-6 : f32
      %34 = vector.broadcast %cst_23 : f32 to vector<16x1xf32>
      %35 = arith.addf %33, %34 : vector<16x1xf32>
      %36 = math.rsqrt %35 : vector<16x1xf32>
      %37 = vector.broadcast %36 : vector<16x1xf32> to vector<16x128xf32>
      %38 = arith.mulf %23, %37 : vector<16x128xf32>
      %39 = vector.broadcast %13 : vector<1x128xf32> to vector<16x128xf32>
      %40 = arith.mulf %38, %39 : vector<16x128xf32>
      %41 = vector.broadcast %14 : vector<1x128xf32> to vector<16x128xf32>
      %42 = arith.addf %40, %41 : vector<16x128xf32>
      %cst_24 = arith.constant 0.000000e+00 : f32
      %43 = vector.broadcast %cst_24 : f32 to vector<16x128xf32>
      %44 = arith.maximumf %42, %43 : vector<16x128xf32>
      %45 = arith.truncf %44 : vector<16x128xf32> to vector<16x128xbf16>
      %c0_25 = arith.constant 0 : index
      %c0_26 = arith.constant 0 : index
      %46 = vector.load %arg7[%c0_25, %c0_26] : memref<128x128xbf16, #tpu.memory_space<vmem>>, vector<128x128xbf16>
      %cst_27 = arith.constant dense<0.000000e+00> : vector<16x128xf32>
      %47 = tpu.matmul %45, %46, %cst_27 {dimension_numbers = #tpu.dot_dimension_numbers<[1], [0], [0], [1], [0, 0, 1, 1], [], []>} : vector<16x128xbf16>, vector<128x128xbf16>, vector<16x128xf32> -> vector<16x128xf32>
      %c0_28 = arith.constant 0 : index
      %c0_29 = arith.constant 0 : index
      %48 = vector.load %arg8[%c0_28, %c0_29] : memref<1x128xf32, #tpu.memory_space<vmem>>, vector<1x128xf32>
      %49 = vector.broadcast %48 : vector<1x128xf32> to vector<16x128xf32>
      %50 = arith.addf %47, %49 : vector<16x128xf32>
      %c0_30 = arith.constant 0 : index
      %c0_31 = arith.constant 0 : index
      %51 = vector.load %arg9[%c0_30, %c0_31] : memref<16x128xf32, #tpu.memory_space<vmem>>, vector<16x128xf32>
      tpu.vector_store %arg9[%c0_30, %c0_31], %50 {strides = array<i32>} : memref<16x128xf32, #tpu.memory_space<vmem>>, vector<16x128xf32>,
    } else {
    }
    return
  }
  func.func @transform_0(%arg0: i32, %arg1: i32) -> (i32, i32) {
    %c0_i32 = arith.constant 0 : i32
    return %arg0, %arg1 : i32, i32
  }
  func.func @transform_1(%arg0: i32, %arg1: i32) -> (i32, i32) {
    %c0_i32 = arith.constant 0 : i32
    %c0_i32_0 = arith.constant 0 : i32
    return %arg1, %c0_i32 : i32, i32
  }
  func.func @transform_2(%arg0: i32, %arg1: i32) -> (i32, i32) {
    %c0_i32 = arith.constant 0 : i32
    %c0_i32_0 = arith.constant 0 : i32
    %c0_i32_1 = arith.constant 0 : i32
    return %c0_i32, %c0_i32_0 : i32, i32
  }
  func.func @transform_3(%arg0: i32, %arg1: i32) -> (i32, i32) {
    %c0_i32 = arith.constant 0 : i32
    %c0_i32_0 = arith.constant 0 : i32
    %c0_i32_1 = arith.constant 0 : i32
    return %c0_i32, %c0_i32_0 : i32, i32
  }
  func.func @transform_4(%arg0: i32, %arg1: i32) -> (i32, i32) {
    %c0_i32 = arith.constant 0 : i32
    %c0_i32_0 = arith.constant 0 : i32
    %c0_i32_1 = arith.constant 0 : i32
    return %c0_i32, %c0_i32_0 : i32, i32
  }
  func.func @transform_5(%arg0: i32, %arg1: i32) -> (i32, i32) {
    %c0_i32 = arith.constant 0 : i32
    %c0_i32_0 = arith.constant 0 : i32
    %c0_i32_1 = arith.constant 0 : i32
    return %c0_i32, %c0_i32_0 : i32, i32
  }
  func.func @transform_6(%arg0: i32, %arg1: i32) -> (i32, i32) {
    %c0_i32 = arith.constant 0 : i32
    %c0_i32_0 = arith.constant 0 : i32
    %c0_i32_1 = arith.constant 0 : i32
    return %c0_i32, %c0_i32_0 : i32, i32
  }
  func.func @transform_7(%arg0: i32, %arg1: i32) -> (i32, i32) {
    %c0_i32 = arith.constant 0 : i32
    %c0_i32_0 = arith.constant 0 : i32
    return %arg0, %c0_i32 : i32, i32
  }
}

</mosaic_0001>

<bundles_post_ra>
// kernel: tpu_custom_call.1
= control target key start
LH: loop header
LB: loop body
LE: loop exit
PB: predicated region body
PF: predicated region fallthrough
CT: control target
= control target key end

     0   :  { %12 = vsyncpa [#allocation4], 0  ;;  %s736_s0 = inlined_call_operand.hbm [shape: bf16[16,128], index: 0, kind: input, shape index: {}]   ;;  %s737_s1 = inlined_call_operand.hbm [shape: bf16[128,128], index: 1, kind: input, shape index: {}]   ;;  %s738_s2 = inlined_call_operand.vmem [shape: f32[1,128], index: 2, kind: input, shape index: {}]   ;;  %s739_s3 = inlined_call_operand.vmem [shape: f32[1,128], index: 3, kind: input, shape index: {}]   ;;  %s740_s4 = inlined_call_operand.vmem [shape: f32[1,128], index: 4, kind: input, shape index: {}]   ;;  %s741_s5 = inlined_call_operand.hbm [shape: bf16[128,128], index: 5, kind: input, shape index: {}]   ;;  %s742_s6 = inlined_call_operand.vmem [shape: f32[1,128], index: 6, kind: input, shape index: {}]   ;;  %s743_s7 = inlined_call_operand.hbm [shape: f32[16,128], index: 7, kind: output, shape index: {}]  }
   0x1   :  { %13 = vsyncpa [#allocation7], 0 }
   0x2   :  { %14 = vsyncpa [#allocation5], 0  ;;  %s592_s24 = smov [#allocation6]   ;;  %s593_s26 = smov [#allocation3]  }
   0x3   :  { %s32_s25 = sshll.u32 %s592_s24, 4  ;;  %s20_s27 = sshll.u32 %s593_s26, 4  ;;  %s33_s25 = int_to_ptr.vmem [resolvable:$true] %s32_s25  ;;  %s642_s27 = int_to_ptr.vmem [resolvable:$true] %s20_s27 }
   0x4   :  { %s498_s30 = scalar_lea.hbm %s737_s1, 1024 }
   0x5   :  { %p499_p0 = scmp.ne.s32.totalorder %s737_s1, %s498_s30  ;;  %p502_p1 = scmp.lt.u32.totalorder %s498_s30, %s737_s1 }
   0x7   :  { %p504_p2 = pnand %p502_p1, %p499_p0 }
   0x9   :  { %507 = shalt.err (!%p504_p2)
}
   0xa   :  { %s508_s12 = scalar_lea.vmem %s33_s25, 1024  ;;  %p513_p4 = scmp.lt.s32.totalorder %s33_s25, %s33_s25 }
   0xb   :  { %p509_p3 = scmp.ne.s32.totalorder %s33_s25, %s508_s12  ;;  %p514_p5 = scmp.lt.s32.totalorder %s508_s12, %s508_s12 }
   0xd   :  { %p515_p6 = por %p514_p5, %p513_p4 }
   0xf   :  { %p516_p7 = pnand %p515_p6, %p509_p3 }
  0x11   :  { %519 = shalt.err (!%p516_p7)
}
  0x12   :  { %s594_s13 = smov 64   ;;  %s595_s14 = smov 4  }
  0x13   :  { %38 = dma.hbm_to_vmem [thread:$0]  %s737_s1, 1024, %s33_s25, [#allocation7], %s594_s13, %s594_s13, %s595_s14  }
  0x14   :  { %s520_s19 = scalar_lea.hbm %s736_s0, 128 }
  0x15   :  { %p521_p8 = scmp.ne.s32.totalorder %s736_s0, %s520_s19  ;;  %p524_p9 = scmp.lt.u32.totalorder %s520_s19, %s736_s0 }
  0x17   :  { %p526_p10 = pnand %p524_p9, %p521_p8 }
  0x19   :  { %529 = shalt.err (!%p526_p10)
}
  0x1a   :  { %s530_s24 = scalar_lea.vmem %s642_s27, 128  ;;  %p535_p12 = scmp.lt.s32.totalorder %s642_s27, %s642_s27 }
  0x1b   :  { %p531_p11 = scmp.ne.s32.totalorder %s642_s27, %s530_s24  ;;  %p536_p13 = scmp.lt.s32.totalorder %s530_s24, %s530_s24 }
  0x1d   :  { %p537_p0 = por %p536_p13, %p535_p12 }
  0x1f   :  { %p538_p1 = pnand %p537_p0, %p531_p11 }
  0x21   :  { %541 = shalt.err (!%p538_p1)
}
  0x22   :  { %26 = dma.hbm_to_vmem [thread:$0]  %s736_s0, 128, %s642_s27, [#allocation4], %s594_s13, %s594_s13, %s595_s14  }
  0x23   :  { %s596_s26 = smov [#allocation8]   ;;  %s542_s8 = scalar_lea.hbm %s741_s5, 1024 }
  0x24   :  { %s50_s28 = sshll.u32 %s596_s26, 4  ;;  %p543_p2 = scmp.ne.s32.totalorder %s741_s5, %s542_s8  ;;  %s51_s28 = int_to_ptr.vmem [resolvable:$true] %s50_s28 }
  0x25   :  { %p546_p3 = scmp.lt.u32.totalorder %s542_s8, %s741_s5 }
  0x27   :  { %p548_p4 = pnand %p546_p3, %p543_p2 }
  0x29   :  { %551 = shalt.err (!%p548_p4)
}
  0x2a   :  { %s552_s15 = scalar_lea.vmem %s51_s28, 1024  ;;  %p557_p6 = scmp.lt.s32.totalorder %s51_s28, %s51_s28 }
  0x2b   :  { %p553_p5 = scmp.ne.s32.totalorder %s51_s28, %s552_s15  ;;  %p558_p7 = scmp.lt.s32.totalorder %s552_s15, %s552_s15 }
  0x2d   :  { %p559_p8 = por %p558_p7, %p557_p6 }
  0x2f   :  { %p560_p9 = pnand %p559_p8, %p553_p5 }
  0x31   :  { %563 = shalt.err (!%p560_p9)
}
  0x32   :  { %56 = dma.hbm_to_vmem [thread:$0]  %s741_s5, 1024, %s51_s28, [#allocation7], %s594_s13, %s594_s13, %s595_s14  }
  0x33   :  { %586 = dma.done.wait [#allocation4], 128  }
  0x34   :  { %587 = vsyncadd [#allocation4], 4294967168 }
  0x35   :  { %588 = dma.done.wait [#allocation7], 2048  }
  0x36   :  { %589 = vsyncadd [#allocation7], 4294965248  ;;  %v597_v0 = vmov 0.0   ;;  %vm598_vm0 = vmmov 0   ;;  %v477_v1 = vld [vmem:[#allocation6] sm:$0xff]   ;;  %v478_v2 = vld [vmem:[#allocation6 + $0x8] sm:$0xff]   ;;  %v218_v18 = vlaneseq }
  0x37   :  { %427 = vmatprep.subr.bf16.mxu0 %v597_v0  ;;  %443 = vmatprep.mubr.msk.bf16.mxu0 %vm598_vm0, %v597_v0  ;;  %v479_v3 = vld [vmem:[#allocation6 + $0x10] sm:$0xff]   ;;  %v480_v4 = vld [vmem:[#allocation6 + $0x18] sm:$0xff]   ;;  %v481_v5 = vld [vmem:[#allocation6 + $0x20] sm:$0xff]  }
  0x38   :  { %447 = vmatprep.subr.bf16.mxu1 %v597_v0  ;;  %463 = vmatprep.mubr.msk.bf16.mxu1 %vm598_vm0, %v597_v0  ;;  %v482_v6 = vld [vmem:[#allocation6 + $0x28] sm:$0xff]   ;;  %v483_v7 = vld [vmem:[#allocation6 + $0x30] sm:$0xff]   ;;  %v484_v8 = vld [vmem:[#allocation6 + $0x38] sm:$0xff]   ;;  %v219_v19 = vand.u32 127, %v218_v18 }
  0x39   :  { %428 = vmatpush3.bf16.msra.mxu0 %v477_v1  ;;  %v485_v9 = vld [vmem:[#allocation3] sm:$0xff]   ;;  %v486_v17 = vld [vmem:[#allocation8] sm:$0xff]   ;;  %v487_v30 = vld [vmem:[#allocation8 + $0x8] sm:$0xff]  }
  0x3a   :  { %429 = vmatprep.subr.bf16.mxu0 %v597_v0  ;;  %v397_v10 = vld [vmem:[%s738_s2] ss:$0 sm:$0xff]  ;;  %448 = vmatpush3.bf16.msra.mxu1 %v486_v17  ;;  %vm220_vm1 = vcmp.lt.s32.totalorder %v219_v19, 32  ;;  %v488_v31 = vld [vmem:[#allocation8 + $0x10] sm:$0xff]   ;;  %v490_v33 = vld [vmem:[#allocation8 + $0x20] sm:$0xff]  }
  0x3b   :  { %449 = vmatprep.subr.bf16.mxu1 %v597_v0  ;;  %v489_v32 = vld [vmem:[#allocation8 + $0x18] sm:$0xff]   ;;  %v491_v34 = vld [vmem:[#allocation8 + $0x28] sm:$0xff]   ;;  %v492_v35 = vld [vmem:[#allocation8 + $0x30] sm:$0xff]  }
  0x3c   :  { %v493_v36 = vld [vmem:[#allocation8 + $0x38] sm:$0xff]  }
  0x3d   :  { %430 = vmatpush3.bf16.msra.mxu0 %v478_v2  ;;  %v398_v44 = vld [vmem:[%s739_s3] ss:$0 sm:$0xff]  ;;  %s599_s3 = smov [#allocation9]  }
  0x3e   :  { %431 = vmatprep.subr.bf16.mxu0 %v597_v0  ;;  %450 = vmatpush3.bf16.msra.mxu1 %v487_v30  ;;  %v399_v48 = vld [vmem:[%s740_s4] ss:$0 sm:$0xff]  ;;  %s375_s20 = sshll.u32 %s599_s3, 4  ;;  %s376_s20 = int_to_ptr.vmem [resolvable:$true] %s375_s20 }
  0x3f   :  { %451 = vmatprep.subr.bf16.mxu1 %v597_v0  ;;  %v400_v56 = vld [vmem:[%s742_s6] ss:$0 sm:$0xff]  ;;  %s564_s4 = scalar_lea.vmem %s376_s20, 256  ;;  %p569_p11 = scmp.lt.s32.totalorder %s376_s20, %s376_s20 }
  0x40   :  { %p565_p10 = scmp.ne.s32.totalorder %s376_s20, %s564_s4  ;;  %p570_p12 = scmp.lt.s32.totalorder %s564_s4, %s564_s4 }
  0x41   :  { %432 = vmatpush3.bf16.msra.mxu0 %v479_v3 }
  0x42   :  { %433 = vmatprep.subr.bf16.mxu0 %v597_v0  ;;  %452 = vmatpush3.bf16.msra.mxu1 %v488_v31  ;;  %p571_p13 = por %p570_p12, %p569_p11 }
  0x43   :  { %453 = vmatprep.subr.bf16.mxu1 %v597_v0 }
  0x44   :  { %p572_p0 = pnand %p571_p13, %p565_p10 }
  0x45   :  { %434 = vmatpush3.bf16.msra.mxu0 %v480_v4 }
  0x46   :  { %435 = vmatprep.subr.bf16.mxu0 %v597_v0  ;;  %454 = vmatpush3.bf16.msra.mxu1 %v489_v32 }
  0x47   :  { %455 = vmatprep.subr.bf16.mxu1 %v597_v0 }
  0x49   :  { %436 = vmatpush3.bf16.msra.mxu0 %v481_v5 }
  0x4a   :  { %437 = vmatprep.subr.bf16.mxu0 %v597_v0  ;;  %456 = vmatpush3.bf16.msra.mxu1 %v490_v33 }
  0x4b   :  { %457 = vmatprep.subr.bf16.mxu1 %v597_v0 }
  0x4d   :  { %438 = vmatpush3.bf16.msra.mxu0 %v482_v6 }
  0x4e   :  { %439 = vmatprep.subr.bf16.mxu0 %v597_v0  ;;  %458 = vmatpush3.bf16.msra.mxu1 %v491_v34 }
  0x4f   :  { %459 = vmatprep.subr.bf16.mxu1 %v597_v0 }
  0x51   :  { %440 = vmatpush3.bf16.msra.mxu0 %v483_v7 }
  0x52   :  { %441 = vmatprep.subr.bf16.mxu0 %v597_v0  ;;  %460 = vmatpush3.bf16.msra.mxu1 %v492_v35 }
  0x53   :  { %461 = vmatprep.subr.bf16.mxu1 %v597_v0 }
  0x55   :  { %442 = vmatpush3.bf16.msra.mxu0 %v484_v8 }
  0x56   :  { %462 = vmatpush3.bf16.msra.mxu1 %v493_v36 }
  0x58   :  { %444 = vmatmul.mubr.bf16.vlgmr.msra.gmra.mrb[0].mxu0 %v485_v9 }
 0x12b   :  { %v183_v11 = vpop.f32.mrb[0].mxu0 }
 0x12c   :  { %v208_v12 = vadd.f32 %v397_v10, %v183_v11  ;;  %v445_v13 = vpop.f32.mrb[1].mxu0 }
 0x12d   :  { %v186_v14 = vpop.f32.mrb[2].mxu0 }
 0x12e   :  { %210 = vadd.xlane.f32.xlu0 %v208_v12  ;;  %v446_v15 = vpop.f32.mrb[3].mxu0  ;;  %v209_v16 = vadd.f32 %v397_v10, %v186_v14 }
 0x132   :  { %212 = vadd.xlane.f32.xlu0 %v209_v16 }
 0x1bb   :  { %v211_v20 = vpop.xlane.xlu0 %210 }
 0x1bc   :  { %v214_v21 = vmul.f32 0.03125, %v211_v20 }
 0x1be   :  { %v216_v22 = vsub.f32 %v208_v12, %v214_v21 }
 0x1bf   :  { %v213_v23 = vpop.xlane.xlu0 %212 }
 0x1c0   :  { %v215_v24 = vmul.f32 0.03125, %v213_v23  ;;  %v221_v25 = vsel %vm220_vm1, %v216_v22, 0.0 }
 0x1c1   :  { %v223_v26 = vmul.f32 %v221_v25, %v221_v25 }
 0x1c2   :  { %v217_v27 = vsub.f32 %v209_v16, %v215_v24 }
 0x1c3   :  { %225 = vadd.xlane.f32.xlu1 %v223_v26 }
 0x1c4   :  { %v222_v28 = vsel %vm220_vm1, %v217_v27, 0.0 }
 0x1c5   :  { %v224_v29 = vmul.f32 %v222_v28, %v222_v28 }
 0x1c7   :  { %227 = vadd.xlane.f32.xlu1 %v224_v29 }
 0x250   :  { %v226_v37 = vpop.xlane.xlu1 %225 }
 0x251   :  { %v229_v38 = vmul.f32 0.03125, %v226_v37 }
 0x253   :  { %v231_v39 = vadd.f32 1e-05, %v229_v38 }
 0x254   :  { %v228_v40 = vpop.xlane.xlu1 %227 }
 0x255   :  { %494 = vrsqrt.f32 %v231_v39  ;;  %v230_v41 = vmul.f32 0.03125, %v228_v40 }
 0x257   :  { %v232_v42 = vadd.f32 1e-05, %v230_v41 }
 0x259   :  { %496 = vrsqrt.f32 %v232_v42 }
 0x25f   :  { %v495_v43 = vpop.eup %494 }
 0x260   :  { %v235_v45 = vmul.f32 %v495_v43, %v216_v22 }
 0x262   :  { %v243_v46 = vmul.f32 %v398_v44, %v235_v45 }
 0x263   :  { %v497_v47 = vpop.eup %496 }
 0x264   :  { %v236_v49 = vmul.f32 %v497_v47, %v217_v27  ;;  %v251_v51 = vadd.f32 %v399_v48, %v243_v46 }
 0x266   :  { %v244_v50 = vmul.f32 %v398_v44, %v236_v49  ;;  %v253_v53 = vmax.f32 %v251_v51, 0.0 }
 0x268   :  { %v252_v52 = vadd.f32 %v399_v48, %v244_v50 }
 0x26a   :  { %v254_v54 = vmax.f32 %v252_v52, 0.0 }
 0x26c   :  { %v255_v55 = vpack.c.bf16 %v254_v54, %v253_v53 }
 0x26e   :  { %464 = vmatmul.mubr.bf16.vlgmr.msra.gmra.mrb[0].mxu1 %v255_v55 }
 0x341   :  { %v361_v57 = vpop.f32.mrb[0].mxu1 }
 0x342   :  { %v362_v58 = vadd.f32 %v400_v56, %v361_v57  ;;  %v465_v59 = vpop.f32.mrb[1].mxu1 }
 0x343   :  { %v364_v60 = vpop.f32.mrb[2].mxu1 }
 0x344   :  { %368 = vst [vmem:[#allocation9] sm:$0xff] %v362_v58  ;;  %v365_v61 = vadd.f32 %v400_v56, %v364_v60  ;;  %v466_v62 = vpop.f32.mrb[3].mxu1 }
 0x346   :  { %369 = vst [vmem:[#allocation9 + $0x8] sm:$0xff] %v365_v61 }
 0x347   :  { %575 = shalt.err (!%p572_p0)
}
 0x348   :  { %s576_s22 = scalar_lea.hbm %s743_s7, 256 }
 0x349   :  { %p577_p1 = scmp.ne.s32.totalorder %s743_s7, %s576_s22  ;;  %p580_p2 = scmp.lt.u32.totalorder %s576_s22, %s743_s7 }
 0x34b   :  { %p582_p3 = pnand %p580_p2, %p577_p1 }
 0x34d   :  { %585 = shalt.err (!%p582_p3)
}
 0x34e   :  { %s600_s26 = smov 128   ;;  %s601_s28 = smov 8  }
 0x34f   :  { %381 = dma.vmem_to_hbm [thread:$0]  %s376_s20, 256, %s743_s7, [#allocation5], %s600_s26, %s600_s26, %s601_s28  }
 0x350   :  { %590 = dma.done.wait [#allocation5], 256  }
 0x351   :  { %591 = vsyncadd [#allocation5], 4294967040 }
 0x352   :  { %385 = vsyncpa [#allocation4], 1 }
 0x353   :  { %386 = vsyncpa [#allocation7], 1 }
 0x354   :  { %387 = vsyncpa [#allocation5], 1 }

</bundles_post_ra>
